<compile_context>
chip_gen: v5e
topology: v5e:2x2
jax: 0.10.0
libtpu: 0.0.40
codegen_flags: <defaults>
</compile_context>

<pallas_src>
import jax
import jax.numpy as jnp
from jax.experimental import pallas as pl
from jax.experimental.pallas import tpu as pltpu


_LANE = 128                              # lane width of a vreg
_MAX_LANE_COLS = 2048                    # widest lane-dense last dim we build
_TARGET_BLOCK_BYTES = 4 * 1024 * 1024    # ~4 MiB per block (v7x-friendly)
_VMEM_LIMIT_BYTES = 32 * 1024 * 1024     # raise v5e's 16 MiB scoped default


def _round_up(x: int, m: int) -> int:
    return (x + m - 1) // m * m


def _round_down(x: int, m: int) -> int:
    return (x // m) * m


def _sublane_multiple(dtype) -> int:
    """Native packed-tile row minimum: 8 for 4B, 16 for 2B, 32 for 1B dtypes."""
    itemsize = jnp.dtype(dtype).itemsize
    return max(8, 32 // max(itemsize, 1))


def _passthrough_kernel(x_ref, o_ref):
    # Identity pass-through (BaseNetwork.forward defines no layers).
    o_ref[...] = x_ref[...]


def _passthrough_pallas(x2d: jnp.ndarray) -> jnp.ndarray:
    """Row-tiled, auto-pipelined identity copy of a lane-dense 2-D slab.

    `x2d` must have a last dim that is a multiple of 128 (the wrapper
    guarantees this), so every store is a full-lane unmasked `vst`.
    """
    rows, cols = x2d.shape
    itemsize = jnp.dtype(x2d.dtype).itemsize
    sub = _sublane_multiple(x2d.dtype)

    # Row tile from a per-block byte budget.  Without aliasing, VMEM holds
    # double-buffered input AND output windows (4x block bytes), so 4 MiB
    # blocks -> ~16 MiB resident, well under the 32 MiB limit we request.
    row_bytes = max(cols * itemsize, 1)
    tb = max(sub, _round_down(_TARGET_BLOCK_BYTES // row_bytes, sub))

    # v7x megacore: for copies >= ~2 MiB make sure there are at least two
    # balanced tiles so both TensorCores get work (free on 1-TC v5e/v6e).
    total_bytes = rows * row_bytes
    if total_bytes >= 2 * 1024 * 1024 and rows >= 2 * sub and pl.cdiv(rows, tb) < 2:
        tb = _round_up(pl.cdiv(rows, 2), sub)

    if tb >= rows:
        tb = rows  # full-extent block dim: always legal, single grid step

    grid = (pl.cdiv(rows, tb),)

    return pl.pallas_call(
        _passthrough_kernel,
        out_shape=jax.ShapeDtypeStruct((rows, cols), x2d.dtype),
        grid=grid,
        in_specs=[pl.BlockSpec((tb, cols), lambda i: (i, 0))],
        out_specs=pl.BlockSpec((tb, cols), lambda i: (i, 0)),
        compiler_params=pltpu.CompilerParams(
            dimension_semantics=("parallel",),
            vmem_limit_bytes=_VMEM_LIMIT_BYTES,
        ),
    )(x2d)


def _lane_dense_passthrough(state2d: jnp.ndarray) -> jnp.ndarray:
    """Present the (B, D) state as a lane-dense slab, copy, restore shape."""
    b, d = state2d.shape
    n = b * d
    flat = state2d.reshape(n)

    # Widest lane-dense last dim (multiple of 128, capped).  Pad the tail in
    # the wrapper — layout plumbing, not compute — so the kernel never emits
    # masked partial stores for a sub-128 last dim.
    cols = min(_round_up(n, _LANE), _MAX_LANE_COLS)
    rows = pl.cdiv(n, cols)
    padded = rows * cols
    if padded != n:
        flat = jnp.pad(flat, (0, padded - n))

    out = _passthrough_pallas(flat.reshape(rows, cols)).reshape(padded)
    if padded != n:
        out = out[:n]
    return out.reshape(b, d)


class BaseNetworkPallas:
    """Pallas-TPU analogue of the abstract BaseNetwork module."""

    def __init__(self, n_observations: int, n_actions: int) -> None:
        self.n_observations = n_observations
        self.n_actions = n_actions
        # No parameters to initialize: the PyTorch __init__ registers none.
        # TODO(synk): a concrete DQN subclass would add bf16 weights here and
        # a tiled MLP kernel (K-reduction as the last, "arbitrary" grid axis,
        # f32 VMEM accumulator with pl.when init/finalize, lane-padded
        # (B, n_actions) output written once per output tile; tm/tn multiples
        # of 256 on v6e/v7x, 128 on v5e).

    def forward(self, state, *, use_kernel: bool = False) -> jnp.ndarray:
        # Keep the caller's dtype (a forced f32 cast would be a separate XLA
        # convert op and would double HBM traffic for bf16 observations).
        state = jnp.asarray(state)
        if state.ndim == 1:
            state = state[None, :]
        if state.ndim != 2:
            raise ValueError(
                f"BaseNetworkPallas.forward expects a 1-D or 2-D state, "
                f"got shape {state.shape}"
            )
        b, d = state.shape
        if d != self.n_observations:
            raise ValueError(
                f"state feature dim {d} != n_observations {self.n_observations}"
            )

        if not use_kernel:
            # Fastest faithful translation of an abstract, compute-free
            # forward(): do nothing at all (no pallas_call dispatch, no
            # HBM->VMEM->HBM round trip).
            return state

        # Optional Pallas pass-through skeleton.
        return _lane_dense_passthrough(state)

    __call__ = forward


if __name__ == "__main__":
    key = jax.random.PRNGKey(0)

    # --- primary case: matches the module's intended (batch, n_observations)
    batch, n_observations, n_actions = 8, 32, 4
    state = jax.random.normal(key, (batch, n_observations), dtype=jnp.float32)
    net = BaseNetworkPallas(n_observations, n_actions)

    # Default path: abstract forward() performs no compute -> no kernel launch.
    out_fast = jax.block_until_ready(net(state))
    assert out_fast.shape == (batch, n_observations)
    assert out_fast.dtype == state.dtype
    assert bool(jnp.allclose(out_fast, state))

    # Pallas pass-through skeleton (lane-dense, n_elems = 256 -> no padding).
    out_kernel = jax.block_until_ready(net(state, use_kernel=True))
    assert out_kernel.shape == (batch, n_observations)
    assert out_kernel.dtype == state.dtype
    assert bool(jnp.allclose(out_kernel, state))

    # --- padding path: n_elems = 100 is not a multiple of 128.
    net_pad = BaseNetworkPallas(20, n_actions)
    state_pad = jax.random.normal(jax.random.PRNGKey(1), (5, 20), dtype=jnp.float32)
    out_pad = jax.block_until_ready(net_pad(state_pad, use_kernel=True))
    assert out_pad.shape == (5, 20)
    assert bool(jnp.allclose(out_pad, state_pad))

    # --- sub-32-bit dtype path: bf16 exercises the 16-row sublane rounding.
    net_bf16 = BaseNetworkPallas(64, n_actions)
    state_bf16 = jax.random.normal(
        jax.random.PRNGKey(2), (16, 64), dtype=jnp.float32
    ).astype(jnp.bfloat16)
    out_bf16 = jax.block_until_ready(net_bf16(state_bf16, use_kernel=True))
    assert out_bf16.shape == (16, 64)
    assert out_bf16.dtype == jnp.bfloat16
    assert bool(jnp.array_equal(out_bf16, state_bf16))

    print("KERNEL_OK")
</pallas_src>

<mosaic_0001>
module attributes {stable_mosaic.version = 11 : i64} {
  func.func @_passthrough_kernel(%arg0: i32, %arg1: memref<1x256xf32, #tpu.memory_space<vmem>>, %arg2: memref<1x256xf32, #tpu.memory_space<vmem>>) attributes {dimension_semantics = [#tpu.dimension_semantics<parallel>], iteration_bounds = array<i64: 1>, scalar_prefetch = 0 : i64, scratch_operands = 0 : i64, tpu.core_type = #tpu.core_type<tc>, window_params = [{transform_indices = @transform_0, window_bounds = array<i64: 1, 256>}, {transform_indices = @transform_1, window_bounds = array<i64: 1, 256>}]} {
    %c0 = arith.constant 0 : index
    %c0_0 = arith.constant 0 : index
    %0 = vector.load %arg1[%c0, %c0_0] : memref<1x256xf32, #tpu.memory_space<vmem>>, vector<1x256xf32>
    %c0_1 = arith.constant 0 : index
    %c0_2 = arith.constant 0 : index
    %1 = vector.load %arg2[%c0_1, %c0_2] : memref<1x256xf32, #tpu.memory_space<vmem>>, vector<1x256xf32>
    tpu.vector_store %arg2[%c0_1, %c0_2], %0 {strides = array<i32>} : memref<1x256xf32, #tpu.memory_space<vmem>>, vector<1x256xf32>,
    return
  }
  func.func @transform_0(%arg0: i32) -> (i32, i32) {
    %c0_i32 = arith.constant 0 : i32
    %c0_i32_0 = arith.constant 0 : i32
    return %arg0, %c0_i32 : i32, i32
  }
  func.func @transform_1(%arg0: i32) -> (i32, i32) {
    %c0_i32 = arith.constant 0 : i32
    %c0_i32_0 = arith.constant 0 : i32
    return %arg0, %c0_i32 : i32, i32
  }
}

</mosaic_0001>

<bundles_post_ra>
// kernel: tpu_custom_call.1
= control target key start
LH: loop header
LB: loop body
LE: loop exit
PB: predicated region body
PF: predicated region fallthrough
CT: control target
= control target key end

     0   :  { %6 = vsyncpa [#allocation3], 0  ;;  %s118_s0 = inlined_call_operand.hbm [shape: f32[1,256], index: 0, kind: input, shape index: {}]   ;;  %s119_s1 = inlined_call_operand.hbm [shape: f32[1,256], index: 1, kind: output, shape index: {}]  }
   0x1   :  { %7 = vsyncpa [#allocation4], 0  ;;  %s13_s8 = sshll.u32 %s118_s0, 4  ;;  %s100_s9 = smov [#allocation2]   ;;  %s14_s8 = int_to_ptr.hbm [resolvable:$true] %s13_s8 }
   0x2   :  { %s15_s10 = sshll.u32 %s100_s9, 4  ;;  %s16_s10 = int_to_ptr.vmem [resolvable:$true] %s15_s10 }
   0x3   :  { %18 = dma.hbm_to_vmem [thread:$0]  %s14_s8, 32, %s16_s10, [#allocation3]  }
   0x4   :  { %96 = dma.done.wait [#allocation3], 32  }
   0x5   :  { %97 = vsyncadd [#allocation3], 4294967264  ;;  %v24_v0 = vlaneseq  ;;  %s101_s11 = smov [#allocation5]   ;;  %s36_s15 = sshll.u32 %s119_s1, 4  ;;  %v23_v1 = vld [vmem:[#allocation2] sm:$0x3]  ;;  %s37_s15 = int_to_ptr.hbm [resolvable:$true] %s36_s15 }
   0x6   :  { %s34_s12 = sshll.u32 %s101_s11, 4  ;;  %s35_s12 = int_to_ptr.vmem [resolvable:$true] %s34_s12 }
   0x7   :  { %vm26_vm0 = vcmp.lt.s32.totalorder %v24_v0, 256 }
   0x8   :  { %28 = vst.msk [vmem:[#allocation5] sm:$0x3] %vm26_vm0, %v23_v1 }
   0x9   :  { %39 = dma.vmem_to_hbm [thread:$0]  %s35_s12, 32, %s37_s15, [#allocation4]  }
   0xa   :  { %98 = dma.done.wait [#allocation4], 32  }
   0xb   :  { %99 = vsyncadd [#allocation4], 4294967264 }
   0xc   :  { %44 = vsyncpa [#allocation3], 1 }
   0xd   :  { %45 = vsyncpa [#allocation4], 1 }

</bundles_post_ra>
